<compile_context>
chip_gen: v7x
topology: tpu7x:2x2x1
jax: 0.10.0
libtpu: 0.0.40
codegen_flags: <defaults>
</compile_context>

<pallas_src>
import math

import jax
import jax.numpy as jnp
from jax.experimental import pallas as pl
from jax.experimental.pallas import tpu as pltpu


def _round_up(n, m):
    return (n + m - 1) // m * m


# ---------------------------------------------------------------------------
# Kernel: one fused MXU matmul per row tile.
#   x_ref: (tm, 3*C)    f32 im2col tile  [x_{t-1} | x_t | x_{t+1}]
#   w_ref: (3*C, D_pad) f32, VMEM-resident (constant index_map)
#   o_ref: (tm, D_pad)  out_dtype (f32 by default, lane-dense stores)
# ---------------------------------------------------------------------------
def _token_embed_kernel(x_ref, w_ref, o_ref):
    o_ref[...] = jnp.dot(
        x_ref[...], w_ref[...], preferred_element_type=jnp.float32
    ).astype(o_ref.dtype)


def prepare_token_embedding_weight(weight):
    """One-time relayout of the PyTorch Conv1d weight.

    weight: (d_model, c_in, 3) -> (3*c_in, D_pad) f32 with
    w_flat[k*c_in + c, d] = weight[d, c, k]; D padded to a multiple of 128 so
    output stores are lane-dense.  Call once at parameter init and reuse.
    """
    D, C, K = weight.shape
    assert K == 3
    D_pad = _round_up(D, 128)
    w = jnp.transpose(weight, (2, 1, 0)).reshape(3 * C, D).astype(jnp.float32)
    if D_pad != D:
        w = jnp.pad(w, ((0, 0), (0, D_pad - D)))
    return w


def _pick_row_tile(M, C3, D_pad, tm_max):
    """Row tile that (a) fits a conservative VMEM budget on every TPU gen
    (v7x has only 64 MiB physical VMEM) and (b) divides M whenever possible
    so the post-kernel unpad slice is a no-op."""
    # per-row VMEM: double-buffered f32 input + double-buffered output + temp
    per_row = 4 * (2 * C3 + 3 * D_pad)
    budget = 24 * 1024 * 1024
    cap = max(8, budget // per_row)
    if tm_max is not None:
        cap = min(cap, max(8, tm_max))
    cap = min(cap, 4096)

    if M <= cap:
        return M, M                      # single block; block == full dim is legal
    t = cap - (cap % 8)
    while t >= 8:                        # largest 8-aligned divisor of M <= cap
        if M % t == 0:
            return t, M
        t -= 8
    t = max(8, cap - (cap % 8))          # fallback: pad M (padded rows are zero)
    return t, _round_up(M, t)


def token_embedding_prepared(x, w_flat, d_model, *, tm_max=None,
                             out_dtype=jnp.float32):
    """x: (B, L, c_in) f32; w_flat: output of prepare_token_embedding_weight.

    Returns (B, L, d_model) out_dtype, matching TokenEmbedding.forward.
    """
    B, L, C = x.shape
    C3, D_pad = w_flat.shape
    assert C3 == 3 * C
    M = B * L

    # Circular +/-1 time shifts (== PyTorch padding_mode='circular', k=3,
    # pad=1): tap 0 sees t-1, tap 1 sees t, tap 2 sees t+1.  Fused into a
    # tiny im2col row [x_{t-1} | x_t | x_{t+1}] so the kernel is one matmul.
    x_prev = jnp.roll(x, 1, axis=1)
    x_next = jnp.roll(x, -1, axis=1)
    xcat = jnp.concatenate([x_prev, x, x_next], axis=-1)
    xcat = xcat.reshape(M, C3).astype(jnp.float32)

    tm, M_pad = _pick_row_tile(M, C3, D_pad, tm_max)
    if M_pad != M:
        xcat = jnp.pad(xcat, ((0, M_pad - M), (0, 0)))   # zero rows -> zero out

    grid = (M_pad // tm,)
    out = pl.pallas_call(
        _token_embed_kernel,
        out_shape=jax.ShapeDtypeStruct((M_pad, D_pad), out_dtype),
        grid=grid,
        in_specs=[
            pl.BlockSpec((tm, C3), lambda i: (i, 0)),
            pl.BlockSpec((C3, D_pad), lambda i: (0, 0)),   # VMEM-resident weight
        ],
        out_specs=pl.BlockSpec((tm, D_pad), lambda i: (i, 0)),
        compiler_params=pltpu.CompilerParams(
            dimension_semantics=("parallel",),   # megacore / v7x 2-TC split
            vmem_limit_bytes=48 * 1024 * 1024,
        ),
    )(xcat, w_flat)

    if M_pad != M:
        out = out[:M]
    if D_pad != d_model:
        out = out[:, :d_model]
    return out.reshape(B, L, d_model)


def token_embedding(x, weight, *, tm_max=None, out_dtype=jnp.float32):
    """Convenience wrapper taking the raw torch-layout weight (d_model, c_in, 3).

    In a training/inference loop, call prepare_token_embedding_weight once at
    init and token_embedding_prepared per step to skip the per-call relayout.
    """
    return token_embedding_prepared(
        x, prepare_token_embedding_weight(weight), weight.shape[0],
        tm_max=tm_max, out_dtype=out_dtype)


def init_token_embedding_weight(key, c_in, d_model):
    """kaiming_normal_(mode='fan_in', nonlinearity='leaky_relu'), shape (d_model, c_in, 3)."""
    fan_in = c_in * 3
    negative_slope = 0.01  # torch default gain param for leaky_relu
    gain = math.sqrt(2.0 / (1.0 + negative_slope ** 2))
    std = gain / math.sqrt(fan_in)
    return std * jax.random.normal(key, (d_model, c_in, 3), dtype=jnp.float32)


def _reference(x, weight):
    # Pure-JAX f32 reference of the circular conv1d (same math, no Pallas).
    x_prev = jnp.roll(x, 1, axis=1)
    x_next = jnp.roll(x, -1, axis=1)
    hi = jax.lax.Precision.HIGHEST
    return (
        jnp.einsum("blc,dc->bld", x_prev, weight[:, :, 0], precision=hi)
        + jnp.einsum("blc,dc->bld", x, weight[:, :, 1], precision=hi)
        + jnp.einsum("blc,dc->bld", x_next, weight[:, :, 2], precision=hi)
    )


if __name__ == "__main__":
    key = jax.random.PRNGKey(0)
    k_x, k_w = jax.random.split(key)

    B, L, c_in, d_model = 2, 23, 4, 32
    x = jax.random.normal(k_x, (B, L, c_in), dtype=jnp.float32)
    weight = init_token_embedding_weight(k_w, c_in, d_model)

    # Hoisted one-time weight relayout (prod path).
    w_flat = prepare_token_embedding_weight(weight)

    # Default tiling: single block (tm == M, no padding along M).
    out_default = jax.block_until_ready(
        token_embedding_prepared(x, w_flat, d_model))
    # Small row tile to exercise the multi-step grid + M-padding fallback path.
    out_tiled = jax.block_until_ready(
        token_embedding_prepared(x, w_flat, d_model, tm_max=16))
    # Convenience wrapper (torch-layout weight).
    out_wrap = jax.block_until_ready(token_embedding(x, weight))

    ref = _reference(x, weight)
    assert out_default.shape == (B, L, d_model)
    assert out_tiled.shape == (B, L, d_model)
    assert jnp.allclose(out_default, ref, atol=1e-4, rtol=1e-4)
    assert jnp.allclose(out_tiled, ref, atol=1e-4, rtol=1e-4)
    assert jnp.allclose(out_wrap, ref, atol=1e-4, rtol=1e-4)

    print("KERNEL_OK")
</pallas_src>

<mosaic_0001>
module attributes {stable_mosaic.version = 11 : i64} {
  func.func @_token_embed_kernel(%arg0: i32, %arg1: memref<46x12xf32, #tpu.memory_space<vmem>>, %arg2: memref<12x128xf32, #tpu.memory_space<vmem>>, %arg3: memref<46x128xf32, #tpu.memory_space<vmem>>) attributes {dimension_semantics = [#tpu.dimension_semantics<parallel>], iteration_bounds = array<i64: 1>, scalar_prefetch = 0 : i64, scratch_operands = 0 : i64, tpu.core_type = #tpu.core_type<tc>, window_params = [{transform_indices = @transform_0, window_bounds = array<i64: 46, 12>}, {pipeline_mode = #tpu.pipeline_mode<synchronous>, transform_indices = @transform_1, window_bounds = array<i64: 12, 128>}, {transform_indices = @transform_2, window_bounds = array<i64: 46, 128>}]} {
    %c0 = arith.constant 0 : index
    %c0_0 = arith.constant 0 : index
    %0 = vector.load %arg1[%c0, %c0_0] : memref<46x12xf32, #tpu.memory_space<vmem>>, vector<46x12xf32>
    %c0_1 = arith.constant 0 : index
    %c0_2 = arith.constant 0 : index
    %1 = vector.load %arg2[%c0_1, %c0_2] : memref<12x128xf32, #tpu.memory_space<vmem>>, vector<12x128xf32>
    %cst = arith.constant dense<0.000000e+00> : vector<46x128xf32>
    %2 = tpu.matmul %0, %1, %cst {dimension_numbers = #tpu.dot_dimension_numbers<[1], [0], [0], [1], [0, 0, 1, 1], [], []>} : vector<46x12xf32>, vector<12x128xf32>, vector<46x128xf32> -> vector<46x128xf32>
    %c0_3 = arith.constant 0 : index
    %c0_4 = arith.constant 0 : index
    %3 = vector.load %arg3[%c0_3, %c0_4] : memref<46x128xf32, #tpu.memory_space<vmem>>, vector<46x128xf32>
    tpu.vector_store %arg3[%c0_3, %c0_4], %2 {strides = array<i32>} : memref<46x128xf32, #tpu.memory_space<vmem>>, vector<46x128xf32>,
    return
  }
  func.func @transform_0(%arg0: i32) -> (i32, i32) {
    %c0_i32 = arith.constant 0 : i32
    %c0_i32_0 = arith.constant 0 : i32
    return %arg0, %c0_i32 : i32, i32
  }
  func.func @transform_1(%arg0: i32) -> (i32, i32) {
    %c0_i32 = arith.constant 0 : i32
    %c0_i32_0 = arith.constant 0 : i32
    %c0_i32_1 = arith.constant 0 : i32
    return %c0_i32, %c0_i32_0 : i32, i32
  }
  func.func @transform_2(%arg0: i32) -> (i32, i32) {
    %c0_i32 = arith.constant 0 : i32
    %c0_i32_0 = arith.constant 0 : i32
    return %arg0, %c0_i32 : i32, i32
  }
}

</mosaic_0001>

<bundles_post_ra>
// kernel: tpu_custom_call.1
= control target key start
LH: loop header
LB: loop body
LE: loop exit
PB: predicated region body
PF: predicated region fallthrough
CT: control target
= control target key end

     0   :  { %vm39_vm0 = vcmask 1043456   ;;  %vm224_vm1 = vmmov 1   ;;  %vm20_vm3 = vcmask 97280   ;;  %s285_s0 = inlined_call_operand.vmem [shape: f32[46,12], index: 0, kind: input, shape index: {}]   ;;  %s286_s1 = inlined_call_operand.vmem [shape: f32[12,128], index: 1, kind: input, shape index: {}]   ;;  %s287_s2 = inlined_call_operand.hbm [shape: f32[46,128], index: 2, kind: output, shape index: {}]  }
   0x1   :  { %v18_v0 = vld [vmem:[%s286_s1] sm:$0xff]  ;;  %v19_v1 = vld [vmem:[%s286_s1 + $0x8] sm:$0xf]  ;;  %v14_v2 = vld [vmem:[%s285_s0 + $0x10] sm:$0xff] }
   0x2   :  { %v188_v3 = vpack.c.bf16 %v19_v1, %v18_v0  ;;  %vm189_vm2 = vmpackc.low %vm39_vm0, %vm224_vm1  ;;  %v12_v4 = vld [vmem:[%s285_s0] sm:$0xff]  ;;  %182 = vmatprep.mubr.msk.f32.mxu1 %vm20_vm3, %v14_v2 }
   0x3   :  { %179 = vmatprep.mubr.msk.f32.mxu0 %vm20_vm3, %v12_v4 }
   0x4   :  { %194 = vmatprep.subr.msk.bf16.mxu1 %vm189_vm2, %v188_v3  ;;  %190 = vmatprep.subr.msk.bf16.mxu0 %vm189_vm2, %v188_v3 }
   0x5   :  { %7 = vsyncpa [#allocation3], 0  ;;  %195 = vmatpush3.bf16.msk.msra.mxu1 %vm189_vm2, %v188_v3  ;;  %193 = vmatpush3.bf16.msk.msra.mxu0 %vm189_vm2, %v188_v3  ;;  %v15_v5 = vld [vmem:[%s285_s0 + $0x18] sm:$0xff]  ;;  %v13_v6 = vld [vmem:[%s285_s0 + $0x8] sm:$0xff]  ;;  %s225_s24 = smov [#allocation2]  }
   0x6   :  { %v16_v7 = vld [vmem:[%s285_s0 + $0x20] sm:$0xff]  ;;  %v17_v8 = vld [vmem:[%s285_s0 + $0x28] sm:$0x3f]  ;;  %s149_s25 = sshll.u32 %s225_s24, 4  ;;  %s150_s25 = int_to_ptr.vmem [resolvable:$true] %s149_s25 }
   0x7   :  { %s200_s26 = scalar_lea.vmem %s150_s25, 768  ;;  %p205_p1 = scmp.lt.s32.totalorder %s150_s25, %s150_s25 }
   0x8   :  { %183 = vmatmul.mubr.msk.f32.vlgmr.msra.gmra.mrb[0].mxu1 %vm20_vm3, %v15_v5  ;;  %180 = vmatmul.mubr.msk.f32.vlgmr.msra.gmra.mrb[0].mxu0 %vm20_vm3, %v13_v6  ;;  %p201_p0 = scmp.ne.s32.totalorder %s150_s25, %s200_s26  ;;  %p206_p2 = scmp.lt.s32.totalorder %s200_s26, %s200_s26 }
   0x9   :  { %185 = vmatprep.mubr.msk.f32.mxu1 %vm20_vm3, %v16_v7 }
   0xa   :  { %p207_p3 = por %p206_p2, %p205_p1 }
   0xc   :  { %186 = vmatmul.mubr.msk.f32.gmra.mrb[2].mxu1 %vm20_vm3, %v17_v8  ;;  %p208_p4 = pnand %p207_p3, %p201_p0 }
  0xdb   :  { %v184_v9 = vpop.f32.mrb[0].mxu1  ;;  %v181_v10 = vpop.f32.mrb[0].mxu0 }
  0xdc   :  { %141 = vst [vmem:[#allocation2 + $0x18] sm:$0xff] %v184_v9  ;;  %v119_v11 = vpop.f32.mrb[1].mxu1  ;;  %139 = vst [vmem:[#allocation2 + $0x8] sm:$0xff] %v181_v10  ;;  %v109_v12 = vpop.f32.mrb[1].mxu0 }
  0xdd   :  { %140 = vst [vmem:[#allocation2 + $0x10] sm:$0xff] %v119_v11  ;;  %138 = vst [vmem:[#allocation2] sm:$0xff] %v109_v12 }
  0xdf   :  { %v187_v13 = vpop.f32.mrb[2].mxu1 }
  0xe0   :  { %143 = vst [vmem:[#allocation2 + $0x28] sm:$0x3f] %v187_v13  ;;  %v129_v14 = vpop.f32.mrb[3].mxu1 }
  0xe1   :  { %142 = vst [vmem:[#allocation2 + $0x20] sm:$0xff] %v129_v14 }
  0xe2   :  { %211 = shalt.err (!%p208_p4)
}
  0xe3   :  { %s212_s28 = scalar_lea.hbm %s287_s2, 768 }
  0xe4   :  { %p213_p5 = scmp.ne.s32.totalorder %s287_s2, %s212_s28  ;;  %p216_p6 = scmp.lt.u32.totalorder %s212_s28, %s287_s2 }
  0xe6   :  { %p218_p7 = pnand %p216_p6, %p213_p5 }
  0xe8   :  { %221 = shalt.err (!%p218_p7)
}
  0xe9   :  { %s226_s5 = smov 128   ;;  %s227_s6 = smov 8  }
  0xea   :  { %155 = dma.vmem_to_hbm [thread:$0]  %s150_s25, 768, %s287_s2, [#allocation3], %s226_s5, %s226_s5, %s227_s6  }
  0xeb   :  { %222 = dma.done.wait [#allocation3], 768  }
  0xec   :  { %223 = vsyncadd [#allocation3], 4294966528 }
  0xed   :  { %159 = vsyncpa [#allocation3], 1 }

</bundles_post_ra>
